<compile_context>
chip_gen: v7x
topology: tpu7x:2x2x1
jax: 0.10.0
libtpu: 0.0.40
codegen_flags: <defaults>
</compile_context>

<pallas_src>
import math

import jax
import jax.numpy as jnp
from jax.experimental import pallas as pl
from jax.experimental.pallas import tpu as pltpu


_BLOCK_BUDGET_BYTES = 8 * 1024 * 1024    # per output block; double-buffered => 16 MiB
_VMEM_LIMIT_BYTES = 48 * 1024 * 1024     # < 64 MiB physical (v7x), << 128 MiB (v5e/v6e)
_SMALL_PROBLEM_BYTES = 2 * 1024 * 1024   # below this, skip the pallas_call entirely


def _sublane_rows(dtype):
    """Native sublane packing: 8 rows for 32-bit, 16 for bf16, 32 for int8."""
    return max(8, 32 // jnp.dtype(dtype).itemsize)


def _make_expand_kernel(chunk_rows):
    def kernel(z_ref, o_ref):
        # z_ref: (1, 1, WL)  pre-tiled, lane-dense latent row for this batch elem.
        # o_ref: (1, th, WL) one H-tile of the flattened output.
        _, th, wl = o_ref.shape

        # One small (chunk_rows, WL) slab: sublane broadcast of the latent row.
        # Hoisted out of the store loop (JAX does not CSE broadcast_in_dim).
        # Chunked stores bound vreg pressure at ~chunk_rows/8 * WL/128 vregs
        # no matter how large th is.
        rows = jnp.broadcast_to(z_ref[0], (chunk_rows, wl))

        n_full = th // chunk_rows
        if n_full:
            @pl.loop(0, n_full)
            def _(i):
                start = pl.multiple_of(i * chunk_rows, chunk_rows)
                o_ref[0, pl.ds(start, chunk_rows), :] = rows

        rem = th - n_full * chunk_rows
        if rem:  # static remainder; only when th == H and H % chunk_rows != 0
            o_ref[0, pl.ds(n_full * chunk_rows, rem), :] = rows[:rem, :]

    return kernel


def _pick_h_tile(h, row_bytes, sublane, budget_bytes, min_h_blocks=1):
    """Largest H-tile (multiple of `sublane`, ideally dividing H) within budget."""
    th_cap = budget_bytes // max(row_bytes, 1)
    if min_h_blocks > 1:
        th_cap = min(th_cap, max(1, h // min_h_blocks))
    if th_cap >= h:
        return h
    th = (th_cap // sublane) * sublane
    if th < sublane:
        # Cannot split legally below one sublane group; take the full axis
        # (block dim equal to the full array dim is always allowed).
        return h
    # Prefer a tile that divides H exactly (no ragged, masked last block).
    t = th
    while t > sublane and h % t != 0:
        t -= sublane
    return t if h % t == 0 else th


def decoder_forward(x, z, *, force_pallas=False):
    """Pallas equivalent of Decoder.forward's concrete compute (_expand_z).

    x: [B, ..., in_dim]   spatial locations (only its shape is consumed,
                          exactly as in the PyTorch module).
    z: [B, latent_dim]    latent representations.

    Returns the expanded latent [B, ..., latent_dim] that decode() would
    consume alongside x.
    """
    assert z.ndim == 2, "z must be [batch, latent_dim]"
    if x.ndim == 2:
        # No spatial axes: _expand_z is the identity on z.
        return z

    B = x.shape[0]
    spatial = tuple(x.shape[1:-1])
    L = z.shape[-1]
    W = spatial[-1]                      # last spatial dim fused with L -> lane-dense
    H = math.prod(spatial[:-1])          # remaining spatial dims flattened
    WL = W * L

    out_dtype = z.dtype                  # NOTE: bf16 latents halve HBM bytes written
    itemsize = jnp.dtype(out_dtype).itemsize
    out_bytes = B * H * WL * itemsize

    if not force_pallas and out_bytes < _SMALL_PROBLEM_BYTES:
        # Tiny problem: launch + per-step overhead dominates the pallas_call;
        # a fused XLA broadcast is strictly faster on every generation.
        return jnp.broadcast_to(
            z.reshape((B,) + (1,) * len(spatial) + (L,)), (B,) + spatial + (L,))

    sublane = _sublane_rows(out_dtype)
    # v7x has 2 TensorCores: keep the total grid-step count even when B is odd
    # by forcing at least two H-tiles (no-op on v5e/v6e's single core).
    min_h_blocks = 2 if (B % 2 == 1 and H >= 2 * sublane) else 1
    th = _pick_h_tile(H, WL * itemsize, sublane, _BLOCK_BUDGET_BYTES, min_h_blocks)
    grid_h = pl.cdiv(H, th)

    # Hoist the lane replication out of the kernel: one tiny one-shot XLA op
    # instead of per-grid-step XLU cross-lane tiling.
    # z_tiled[b, 0, j*L + l] == z[b, l].
    z_tiled = jnp.tile(z, (1, W)).reshape(B, 1, WL)

    kernel = _make_expand_kernel(sublane)

    out_flat = pl.pallas_call(
        kernel,
        out_shape=jax.ShapeDtypeStruct((B, H, WL), out_dtype),
        grid_spec=pl.GridSpec(
            grid=(B, grid_h),
            # Batch row selected by the index_map; only a WL-wide row lives in
            # VMEM and it is only re-DMA'd when the batch index changes.
            in_specs=[pl.BlockSpec((1, 1, WL), lambda b, h: (b, 0, 0))],
            # Lane-dense output block (trailing dim W*L) -> unmasked vst.
            out_specs=pl.BlockSpec((1, th, WL), lambda b, h: (b, h, 0)),
        ),
        compiler_params=pltpu.CompilerParams(
            dimension_semantics=("parallel", "parallel"),
            vmem_limit_bytes=_VMEM_LIMIT_BYTES,
        ),
        cost_estimate=pl.CostEstimate(
            flops=0,
            transcendentals=0,
            bytes_accessed=out_bytes + B * WL * itemsize,
        ),
    )(z_tiled)

    # Row-major reshape back to the module's layout; pure view, no data copy.
    return out_flat.reshape((B,) + spatial + (L,))


if __name__ == "__main__":
    key = jax.random.PRNGKey(0)
    kx, kz = jax.random.split(key)

    B, H, W = 2, 16, 16
    input_dim, latent_dim = 2, 64

    x = jax.random.normal(kx, (B, H, W, input_dim), dtype=jnp.float32)
    z = jax.random.normal(kz, (B, latent_dim), dtype=jnp.float32)

    # Pure-JAX reference for _expand_z (same semantics as the torch view/expand).
    ref = jnp.broadcast_to(z[:, None, None, :], (B, H, W, latent_dim))

    # Exercise the Pallas kernel path explicitly (demo shape is below the
    # small-problem bypass threshold) ...
    out_kernel = jax.block_until_ready(decoder_forward(x, z, force_pallas=True))
    # ... and the default path (tiny problems bypass the pallas_call).
    out_default = jax.block_until_ready(decoder_forward(x, z))

    for out in (out_kernel, out_default):
        assert out.shape == (B, H, W, latent_dim), out.shape
        assert out.dtype == jnp.float32, out.dtype
        assert jnp.array_equal(out, ref), "mismatch vs reference broadcast"

    print("KERNEL_OK")
</pallas_src>

<mosaic_0001>
module attributes {stable_mosaic.version = 11 : i64} {
  func.func @kernel(%arg0: i32, %arg1: i32, %arg2: memref<1x1x1024xf32, #tpu.memory_space<vmem>>, %arg3: memref<1x16x1024xf32, #tpu.memory_space<vmem>>) attributes {dimension_semantics = [#tpu.dimension_semantics<parallel>, #tpu.dimension_semantics<parallel>], iteration_bounds = array<i64: 2, 1>, scalar_prefetch = 0 : i64, scratch_operands = 0 : i64, tpu.core_type = #tpu.core_type<tc>, window_params = [{transform_indices = @transform_0, window_bounds = array<i64: 1, 1, 1024>}, {transform_indices = @transform_1, window_bounds = array<i64: 1, 16, 1024>}]} {
    %c0 = arith.constant 0 : index
    %c0_0 = arith.constant 0 : index
    %c0_1 = arith.constant 0 : index
    %0 = vector.load %arg2[%c0, %c0_0, %c0_1] : memref<1x1x1024xf32, #tpu.memory_space<vmem>>, vector<1x1x1024xf32>
    %1 = vector.shape_cast %0 : vector<1x1x1024xf32> to vector<1x1024xf32>
    %2 = vector.shape_cast %1 : vector<1x1024xf32> to vector<1x1024xf32>
    %3 = vector.broadcast %2 : vector<1x1024xf32> to vector<8x1024xf32>
    %c0_i32 = arith.constant 0 : i32
    %c2_i32 = arith.constant 2 : i32
    %4 = arith.addi %c0_i32, %c2_i32 : i32
    %c1_i32 = arith.constant 1 : i32
    scf.for %arg4 = %c0_i32 to %4 step %c1_i32  : i32 {
      %c1_i32_3 = arith.constant 1 : i32
      %5 = arith.muli %arg4, %c1_i32_3 : i32
      %c0_i32_4 = arith.constant 0 : i32
      %6 = arith.addi %c0_i32_4, %5 : i32
      %c8_i32 = arith.constant 8 : i32
      %7 = arith.muli %6, %c8_i32 : i32
      %8 = tpu.assume_multiple %7, 8 : i32
      %c0_5 = arith.constant 0 : index
      %9 = arith.index_cast %8 : i32 to index
      %c0_6 = arith.constant 0 : index
      %10 = vector.load %arg3[%c0_5, %9, %c0_6] : memref<1x16x1024xf32, #tpu.memory_space<vmem>>, vector<1x8x1024xf32>
      %11 = vector.shape_cast %10 : vector<1x8x1024xf32> to vector<8x1024xf32>
      %12 = vector.shape_cast %3 : vector<8x1024xf32> to vector<1x8x1024xf32>
      tpu.vector_store %arg3[%c0_5, %9, %c0_6], %12 {strides = array<i32>} : memref<1x16x1024xf32, #tpu.memory_space<vmem>>, vector<1x8x1024xf32>,
    }
    %c2_i32_2 = arith.constant 2 : i32
    return
  }
  func.func @transform_0(%arg0: i32, %arg1: i32) -> (i32, i32, i32) {
    %c0_i32 = arith.constant 0 : i32
    %c0_i32_0 = arith.constant 0 : i32
    %c0_i32_1 = arith.constant 0 : i32
    return %arg0, %c0_i32, %c0_i32_0 : i32, i32, i32
  }
  func.func @transform_1(%arg0: i32, %arg1: i32) -> (i32, i32, i32) {
    %c0_i32 = arith.constant 0 : i32
    %c0_i32_0 = arith.constant 0 : i32
    return %arg0, %arg1, %c0_i32 : i32, i32, i32
  }
}

</mosaic_0001>

<bundles_post_ra>
// kernel: tpu_custom_call.1
= control target key start
LH: loop header
LB: loop body
LE: loop exit
PB: predicated region body
PF: predicated region fallthrough
CT: control target
= control target key end

     0   :  { %6 = vsyncpa [#allocation3], 0  ;;  %s735_s0 = inlined_call_operand.hbm [shape: f32[2,1,1024], index: 0, kind: input, shape index: {}]   ;;  %s736_s1 = inlined_call_operand.hbm [shape: f32[2,16,1024], index: 1, kind: output, shape index: {}]  }
   0x1   :  { %8 = vsyncpa [#allocation3 + $0x1], 0 }
   0x2   :  { %9 = vsyncpa [#allocation4], 0 }
   0x3   :  { %11 = vsyncpa [#allocation4 + $0x1], 0  ;;  %s547_s6 = smov 0   ;;  %s549_s7 = smov 0  }
   0x4   :  { %s551_s8 = smov 0   ;;  %s553_s9 = smov 0  }
   0x5   :  { %s555_s10 = smov 0   ;;  %s557_s11 = smov 0  }
   0x6 LB: > { %s318_s12 = sadd.s32 4294967295, %s527_s11   ;;  %s319_s13 = sadd.s32 4294967294, %s527_s11   ;;  %s527_s11 = sphi %s557_s11, %s17_s11   ;;  %s523_s10 = sphi %s555_s10, %s752_s10   ;;  %s519_s9 = sphi %s553_s9, %s751_s9   ;;  %s515_s8 = sphi %s551_s8, %s750_s8   ;;  %s511_s7 = sphi %s549_s7, %s749_s7   ;;  %s507_s6 = sphi %s547_s6, %s748_s6  }
   0x7   : > { %s29_s14 = sadd.s32 1, %s523_s10  ;;  %s36_s15 = sadd.s32 1, %s515_s8 }
   0x8   : > { %p31_p0 = scmp.ge.s32.totalorder %s29_s14, 2  ;;  %p43_p1 = scmp.ne.s32.totalorder %s515_s8, %s511_s7 }
   0x9   : > { %p44_p2 = scmp.eq.s32.totalorder %s527_s11, 0  ;;  %p49_p3 = scmp.ne.s32.totalorder %s511_s7, %s507_s6 }
   0xa   : > { %s754_s14 = smov (%p31_p0, %s29_s14), 0  ;;  %p50_p5 = scmp.eq.s32.totalorder %s318_s12, 0 }
   0xb   : > { %p588_p4 = por %p44_p2, %p43_p1  ;;  %s33_s17 = ssub.s32 %s523_s10, %s754_s14 }
   0xc   : > { %p75_p6 = scmp.eq.s32.totalorder %s318_s12, 1  ;;  %p34_p7 = scmp.eq.s32.totalorder %s33_s17, 0 }
   0xd   : > { %p594_p8 = por %p50_p5, %p49_p3  ;;  %p81_p10 = scmp.eq.s32.totalorder %s319_s13, 1 }
   0xe   : > { %p598_p9 = por %p75_p6, %p43_p1  ;;  %p351_p13 = scmp.lt.s32.totalorder %s527_s11, 2 }
   0xf   : > { %s603_s20 = scalar_select %p34_p7, %s515_s8, %s36_s15  }
  0x10   : > { %s740_s19 = scalar_select %p598_p9, 1, 0 }
  0x11   : > { %p605_p11 = por %p81_p10, %p49_p3  ;;  %s101_s22 = sand.u32 1, %s515_s8  }
  0x12   : > { %s322_s23 = sshll.u32 %s101_s22, 3  ;;  %s336_s24 = sshll.u32 %s523_s10, 7 }
  0x13   : > { %s741_s21 = scalar_select %p605_p11, 1, 0 }
  0x14   : > { %s616_s27 = scalar_lea.hbm %s735_s0, %s336_s24  ;;  %s105_s28 = scalar_lea.vmem [#allocation2], %s322_s23 }
  0x15   : > { %s113_s29 = sshll.u32 %s105_s28, 4  ;;  %p622_p0 = pnand %p351_p13, %p588_p4  ;;  %s618_s29 = int_to_ptr.vmem [resolvable:$true] %s113_s29 }
  0x16   : > { %s102_s2 = scalar_lea.sflag [#allocation3], %s101_s22  ;;  %s411_s3 = scalar_lea.hbm %s616_s27, 128 }
  0x17   : > { %p412_p3 = scmp.ne.s32.totalorder %s616_s27, %s411_s3  ;;  %p413_p5 = pneg %p622_p0 }
  0x18   : > { %s416_s12 = scalar_lea.hbm %s735_s0, 256  ;;  %p417_p4 = scmp.lt.u32.totalorder %s616_s27, %s735_s0 }
  0x19   : > { %p414_p6 = pnand %p413_p5, %p412_p3  ;;  %p418_p10 = scmp.lt.u32.totalorder %s416_s12, %s411_s3 }
  0x1a   : > { %p420_p12 = scmp.lt.u32.totalorder %s411_s3, %s616_s27 }
  0x1b   : > { %p415_p7 = pneg %p414_p6  ;;  %p419_p13 = por %p418_p10, %p417_p4 }
  0x1d   : > { %p421_p1 = por %p420_p12, %p419_p13 }
  0x1f   : > { %p422_p2 = pnand %p421_p1, %p415_p7 }
  0x21   : > { %425 = shalt.err (!%p422_p2)
}
  0x22   : > { %s426_s16 = scalar_lea.vmem %s618_s29, 128  ;;  %s533_s17 = smov [#allocation2]  }
  0x23   : > { %p427_p3 = scmp.ne.s32.totalorder %s618_s29, %s426_s16  ;;  %s431_s22 = sshll.u32 %s533_s17, 4  ;;  %s432_s22 = int_to_ptr.vmem [resolvable:$false] %s431_s22 }
  0x24   : > { %s433_s23 = scalar_lea.vmem %s432_s22, 256  ;;  %p434_p9 = scmp.lt.s32.totalorder %s618_s29, %s432_s22 }
  0x25   : > { %p429_p6 = pnand %p427_p3, %p413_p5  ;;  %p435_p4 = scmp.lt.s32.totalorder %s433_s23, %s426_s16 }
  0x27   : > { %p430_p11 = pneg %p429_p6  ;;  %p436_p10 = por %p435_p4, %p434_p9 }
  0x29   : > { %p437_p12 = pnand %p436_p10, %p430_p11 }
  0x2b   : > { %440 = shalt.err (!%p437_p12)
}
  0x2c   : > { %346 = dma.hbm_to_vmem [thread:$0]  (!%p622_p0), %s616_s27, 128, %s618_s29, %s102_s2  }
  0x2d   : > { %p743_p1 = scmp.lt.s32.totalorder %s527_s11, 3  ;;  %p744_p2 = scmp.ge.s32.totalorder %s527_s11, 1 }
  0x2f   : > { %p119_p5 = pnand %p744_p2, %p743_p1 }
  0x30   : > { %s658_s24 = sand.u32 (!%p119_p5), 1, %s511_s7  }
  0x31   : > { %122 = sbr.rel (%p119_p5) target bundleno = 89 (0x59), region = 24  ;;  %s326_s25 = sshll.u32 (!%p119_p5), %s658_s24, 3 }
  0x32   : > { %s125_s26 = scalar_lea.sflag (!%p119_p5), [#allocation3], %s658_s24  ;;  %s128_s28 = scalar_lea.vmem (!%p119_p5), [#allocation2], %s326_s25 }
  0x38   : > { %498 = dma.done.wait (%p594_p8), %s125_s26, 128  }
  0x39   : > { %500 = vsyncadd (%p594_p8), %s125_s26, 4294967168  ;;  %s327_s27 = sshll.u32 %s658_s24, 7  ;;  %v148_v0 = vld [vmem:[%s128_s28] sm:$0xff]  ;;  %s669_s30 = smov 0  }
  0x3a   : > { %s667_s29 = scalar_lea.vmem [#allocation5], %s327_s27 }
  0x3b LB: >> { %v157_v1 = vlaneseq  ;;  %s328_s2 = sshll.u32 %s531_s30, 3  ;;  %s154_s30 = sadd.s32 1, %s531_s30   ;;  %s531_s30 = sphi %s669_s30, %s154_s30  }
  0x3c   : >> { %s197_s3 = sshra.s32 %s328_s2, 3  ;;  %p151_p8 = scmp.ge.s32.totalorder %s154_s30, 2  }
  0x3d   : >> { %v158_v2 = vshrl.u32 %v157_v1, 7  ;;  %s337_s18 = sshll.u32 %s197_s3, 6  ;;  %s338_s5 = sshll.u32 (%p151_p8), %s519_s9, 11 }
  0x3e   : >> { %s201_s4 = scalar_lea.vmem %s667_s29, %s337_s18 [#allocation5]  ;;  %s683_s15 = scalar_lea.hbm (%p151_p8), %s736_s1, %s338_s5 }
  0x3f   : >> { %v159_v3 = vsub.s32 0, %v158_v2  ;;  %v163_v4 = vsub.s32 1, %v158_v2  ;;  %v167_v5 = vsub.s32 2, %v158_v2  ;;  %v171_v6 = vsub.s32 3, %v158_v2  ;;  %s227_s16 = sshll.u32 (%p151_p8), %s667_s29, 4  ;;  %s211_s17 = scalar_lea.sflag (%p151_p8), [#allocation4], %s658_s24  ;;  %s686_s16 = int_to_ptr.vmem [resolvable:$true] %s227_s16 }
  0x40   : >> { %v175_v7 = vsub.s32 4, %v158_v2  ;;  %v179_v8 = vsub.s32 5, %v158_v2  ;;  %v183_v9 = vsub.s32 6, %v158_v2  ;;  %v187_v10 = vsub.s32 7, %v158_v2  ;;  %153 = sbr.rel (!%p151_p8) target bundleno = 59 (0x3b), region = 77  ;;  %s441_s22 = scalar_lea.vmem (%p151_p8), %s686_s16, 2048 }
  0x41   : >> { %v160_v11 = vrot.slane %v148_v0, %v159_v3  ;;  %v164_v12 = vrot.slane %v148_v0, %v163_v4  ;;  %v168_v13 = vrot.slane %v148_v0, %v167_v5  ;;  %v172_v14 = vrot.slane %v148_v0, %v171_v6  ;;  %p442_p9 = scmp.ne.s32.totalorder (%p151_p8), %s686_s16, %s441_s22  ;;  %p745_p11 = scmp.ne.s32.totalorder (%p151_p8), %s740_s19, 0 }
  0x42   : >> { %v176_v15 = vrot.slane %v148_v0, %v175_v7  ;;  %v180_v16 = vrot.slane %v148_v0, %v179_v8  ;;  %v184_v17 = vrot.slane %v148_v0, %v183_v9  ;;  %v188_v18 = vrot.slane %v148_v0, %v187_v10  ;;  %s534_s23 = smov (%p151_p8), [#allocation5]  }
  0x43   : >> { %202 = vst [vmem:[%s201_s4] sm:$0xff] %v160_v11  ;;  %203 = vst [vmem:[%s201_s4 + $0x8] sm:$0xff] %v164_v12  ;;  %p443_p0 = pnand (%p151_p8), %p442_p9, %p745_p11  ;;  %s445_s25 = sshll.u32 (%p151_p8), %s534_s23, 4  ;;  %s446_s25 = int_to_ptr.vmem [resolvable:$false] %s445_s25 }
  0x44   : >> { %204 = vst [vmem:[%s201_s4 + $0x10] sm:$0xff] %v168_v13  ;;  %205 = vst [vmem:[%s201_s4 + $0x18] sm:$0xff] %v172_v14  ;;  %s447_s9 = scalar_lea.vmem (%p151_p8), %s446_s25, 4096  ;;  %p448_p13 = scmp.lt.s32.totalorder (%p151_p8), %s686_s16, %s446_s25 }
  0x45   : >> { %206 = vst [vmem:[%s201_s4 + $0x20] sm:$0xff] %v176_v15  ;;  %207 = vst [vmem:[%s201_s4 + $0x28] sm:$0xff] %v180_v16  ;;  %p444_p7 = pneg (%p151_p8), %p443_p0  ;;  %p449_p3 = scmp.lt.s32.totalorder (%p151_p8), %s447_s9, %s441_s22 }
  0x46   : >> { %208 = vst [vmem:[%s201_s4 + $0x30] sm:$0xff] %v184_v17  ;;  %209 = vst [vmem:[%s201_s4 + $0x38] sm:$0xff] %v188_v18 }
  0x47   : > { %p450_p6 = por %p449_p3, %p448_p13 }
  0x49   : > { %p451_p4 = pnand %p450_p6, %p444_p7 }
  0x4b   : > { %454 = shalt.err (!%p451_p4)
}
  0x4c   : > { %s455_s26 = scalar_lea.hbm %s683_s15, 2048  ;;  %s459_s29 = scalar_lea.hbm %s736_s1, 4096 }
  0x4d   : > { %p456_p10 = scmp.ne.s32.totalorder %s683_s15, %s455_s26  ;;  %p460_p2 = scmp.lt.u32.totalorder %s683_s15, %s736_s1 }
  0x4e   : > { %p461_p5 = scmp.lt.u32.totalorder %s459_s29, %s455_s26  ;;  %p463_p9 = scmp.lt.u32.totalorder %s455_s26, %s683_s15 }
  0x4f   : > { %p457_p12 = pnand %p456_p10, %p745_p11 }
  0x50   : > { %p462_p8 = por %p461_p5, %p460_p2 }
  0x51   : > { %p458_p1 = pneg %p457_p12 }
  0x52   : > { %p464_p0 = por %p463_p9, %p462_p8 }
  0x54   : > { %p465_p7 = pnand %p464_p0, %p458_p1 }
  0x56   : > { %468 = shalt.err (!%p465_p7)
}
  0x57   : > { %s535_s3 = smov 1024   ;;  %s536_s18 = smov 64  }
  0x58   : > { %341 = dma.vmem_to_hbm [thread:$0]  (%p745_p11), %s686_s16, 2048, %s683_s15, %s211_s17, %s535_s3, %s535_s3, %s536_s18  }
  0x59 PF: > { %s242_s4 = sand.u32 1, %s507_s6   ;;  %p746_p13 = scmp.ne.s32.totalorder %s741_s21, 0 }
  0x5a   : > { %p747_p3 = scmp.ge.s32.totalorder %s527_s11, 2  ;;  %s243_s5 = scalar_lea.sflag [#allocation4], %s242_s4 }
  0x5c   : > { %p348_p6 = pnand %p747_p3, %p746_p13 }
  0x5e   : > { %502 = dma.done.wait (!%p348_p6), %s243_s5, 2048  }
  0x5f   : > { %504 = vsyncadd (!%p348_p6), %s243_s5, 4294965248  ;;  %s17_s11 = sadd.s32 1, %s527_s11   ;;  %s748_s6 = smov %s511_s7 }
  0x60   : > { %p14_p4 = scmp.ge.s32.totalorder %s17_s11, 4   ;;  %s749_s7 = smov %s515_s8 }
  0x61   : > { %s750_s8 = smov %s603_s20  ;;  %s751_s9 = smov %s523_s10 }
  0x62   : > { %s752_s10 = smov %s754_s14  ;;  %16 = sbr.rel (!%p14_p4) target bundleno = 6 (0x6), region = 88 }
  0x69   :  { %248 = vsyncpa [#allocation3], 1 }
  0x6a   :  { %250 = vsyncpa [#allocation3 + $0x1], 1 }
  0x6b   :  { %251 = vsyncpa [#allocation4], 1 }
  0x6c   :  { %253 = vsyncpa [#allocation4 + $0x1], 1 }

</bundles_post_ra>
